<compile_context>
chip_gen: v7x
topology: tpu7x:2x2x1
jax: 0.10.0
libtpu: 0.0.40
codegen_flags: <defaults>
</compile_context>

<pallas_src>
import functools

import jax
import jax.numpy as jnp
from jax import lax
from jax.experimental import pallas as pl

EPS = 1e-5


def _rmlp_kernel(x_ref, w1_ref, b1_ref, w2_ref, b2_ref, w3_ref, b3_ref,
                 aw_ref, ab_ref, inv_aw_ref, out_ref, *, B, C):
    aw = aw_ref[...]          # (1, C) RevIN affine weight
    ab = ab_ref[...]          # (1, C) RevIN affine bias
    inv_aw = inv_aw_ref[...]  # (1, C) == 1 / (aw + EPS**2), precomputed in XLA

    # ---- RevIN 'norm' (stats over time per (batch, channel)) and build the
    #      (B*C, T) slab that feeds the MXU. B is small & static -> unrolled.
    rows, means, stdevs = [], [], []
    for b in range(B):
        xb = x_ref[b]                                     # (T, C)
        mean = jnp.mean(xb, axis=0, keepdims=True)        # (1, C)
        var = jnp.mean((xb - mean) ** 2, axis=0, keepdims=True)  # unbiased=False
        inv_std = lax.rsqrt(var + EPS)                    # EUP, no VPU divide
        stdev = jnp.sqrt(var + EPS)
        xn = (xb - mean) * inv_std * aw + ab              # (T, C)
        rows.append(xn.T)                                 # (C, T)  in-kernel transpose
        means.append(mean)
        stdevs.append(stdev)
    xt = jnp.concatenate(rows, axis=0)                    # (B*C, T)

    # ---- temporal MLP + projection: single M = B*C matmul chain on the MXU ----
    h = jnp.dot(xt, w1_ref[...], preferred_element_type=jnp.float32) + b1_ref[...]
    h = jnp.maximum(h, 0.0)                               # (B*C, D)
    t = jnp.dot(h, w2_ref[...], preferred_element_type=jnp.float32) + b2_ref[...]
    p = jnp.dot(t, w3_ref[...], preferred_element_type=jnp.float32) + b3_ref[...]
    # p: (B*C, H)

    # ---- RevIN 'denorm', emitted directly in the (B, H, C) output layout ----
    pT = p.T                                              # (H, B*C)
    for b in range(B):
        pb = pT[:, b * C:(b + 1) * C]                     # (H, C)
        ob = (pb - ab) * inv_aw
        out_ref[b] = ob * stdevs[b] + means[b]            # (H, C)


@jax.jit
def rmlp_forward(x, params):
    """x: (B, T, C) float32 -> (B, H, C), matching the PyTorch Model.forward."""
    w1, b1, w2, b2, w3, b3, aw, ab = params
    B, T, C = x.shape
    D = w1.shape[1]
    H = w3.shape[1]

    aw2 = aw.reshape(1, C)
    ab2 = ab.reshape(1, C)
    inv_aw2 = 1.0 / (aw2 + EPS * EPS)     # per-channel constant, computed once in XLA
    b1r = b1.reshape(1, D)
    b2r = b2.reshape(1, T)
    b3r = b3.reshape(1, H)

    kernel = functools.partial(_rmlp_kernel, B=B, C=C)

    # No grid / BlockSpecs: whole (tiny) arrays are placed in VMEM for a single
    # kernel invocation; weights are resident (no per-step re-DMA).
    return pl.pallas_call(
        kernel,
        out_shape=jax.ShapeDtypeStruct((B, H, C), jnp.float32),
    )(x, w1, b1r, w2, b2r, w3, b3r, aw2, ab2, inv_aw2)


def rmlp_reference(x, params):
    """Pure-JAX reference mirroring the PyTorch forward."""
    w1, b1, w2, b2, w3, b3, aw, ab = params
    mean = jnp.mean(x, axis=1, keepdims=True)                       # (B,1,C)
    stdev = jnp.sqrt(jnp.var(x, axis=1, keepdims=True) + EPS)       # unbiased=False
    xn = (x - mean) / stdev * aw + ab                               # RevIN norm (affine)
    xt = jnp.transpose(xn, (0, 2, 1))                               # (B,C,T)
    h = jax.nn.relu(xt @ w1 + b1)                                   # (B,C,D)
    t = h @ w2 + b2                                                 # (B,C,T)
    p = t @ w3 + b3                                                 # (B,C,H)
    p = jnp.transpose(p, (0, 2, 1))                                 # (B,H,C)
    p = (p - ab) / (aw + EPS * EPS)                                 # RevIN denorm
    return p * stdev + mean


def init_params(key, T, D, H, C):
    ks = jax.random.split(key, 8)
    w1 = jax.random.normal(ks[0], (T, D), jnp.float32) * 0.1
    b1 = jax.random.normal(ks[1], (D,), jnp.float32) * 0.01
    w2 = jax.random.normal(ks[2], (D, T), jnp.float32) * 0.1
    b2 = jax.random.normal(ks[3], (T,), jnp.float32) * 0.01
    w3 = jax.random.normal(ks[4], (T, H), jnp.float32) * 0.1
    b3 = jax.random.normal(ks[5], (H,), jnp.float32) * 0.01
    # RevIN affine params init to ones/zeros; perturb slightly so the test
    # actually exercises the affine norm/denorm path.
    aw = 1.0 + 0.1 * jax.random.normal(ks[6], (C,), jnp.float32)
    ab = 0.1 * jax.random.normal(ks[7], (C,), jnp.float32)
    return (w1, b1, w2, b2, w3, b3, aw, ab)


if __name__ == "__main__":
    # configs: past_history=16, d_model=32, forecast_horizon=8, num_series=4
    B, T, D, H, C = 2, 16, 32, 8, 4
    key = jax.random.PRNGKey(0)
    kx, kp = jax.random.split(key)
    x = jax.random.normal(kx, (B, T, C), jnp.float32)
    y = jnp.zeros((B, H, C), jnp.float32)   # unused by forward (parity with PyTorch signature)
    params = init_params(kp, T, D, H, C)

    out = rmlp_forward(x, params)
    out = jax.block_until_ready(out)

    ref = rmlp_reference(x, params)
    assert out.shape == (B, H, C)
    assert jnp.allclose(out, ref, atol=1e-4, rtol=1e-4), "mismatch vs reference"
    print("KERNEL_OK")
</pallas_src>

<mosaic_0001>
module attributes {stable_mosaic.version = 11 : i64} {
  func.func @_rmlp_kernel(%arg0: memref<2x16x4xf32, #tpu.memory_space<vmem>>, %arg1: memref<16x32xf32, #tpu.memory_space<vmem>>, %arg2: memref<1x32xf32, #tpu.memory_space<vmem>>, %arg3: memref<32x16xf32, #tpu.memory_space<vmem>>, %arg4: memref<1x16xf32, #tpu.memory_space<vmem>>, %arg5: memref<16x8xf32, #tpu.memory_space<vmem>>, %arg6: memref<1x8xf32, #tpu.memory_space<vmem>>, %arg7: memref<1x4xf32, #tpu.memory_space<vmem>>, %arg8: memref<1x4xf32, #tpu.memory_space<vmem>>, %arg9: memref<1x4xf32, #tpu.memory_space<vmem>>, %arg10: memref<2x8x4xf32, #tpu.memory_space<vmem>>) attributes {dimension_semantics = [], scalar_prefetch = 0 : i64, scratch_operands = 0 : i64, tpu.core_type = #tpu.core_type<tc>} {
    %c0 = arith.constant 0 : index
    %c0_0 = arith.constant 0 : index
    %0 = vector.load %arg7[%c0, %c0_0] : memref<1x4xf32, #tpu.memory_space<vmem>>, vector<1x4xf32>
    %c0_1 = arith.constant 0 : index
    %c0_2 = arith.constant 0 : index
    %1 = vector.load %arg8[%c0_1, %c0_2] : memref<1x4xf32, #tpu.memory_space<vmem>>, vector<1x4xf32>
    %c0_3 = arith.constant 0 : index
    %c0_4 = arith.constant 0 : index
    %2 = vector.load %arg9[%c0_3, %c0_4] : memref<1x4xf32, #tpu.memory_space<vmem>>, vector<1x4xf32>
    %c0_5 = arith.constant 0 : index
    %c0_6 = arith.constant 0 : index
    %c0_7 = arith.constant 0 : index
    %3 = vector.load %arg0[%c0_5, %c0_6, %c0_7] : memref<2x16x4xf32, #tpu.memory_space<vmem>>, vector<1x16x4xf32>
    %4 = vector.shape_cast %3 : vector<1x16x4xf32> to vector<16x4xf32>
    %cst = arith.constant dense<0.000000e+00> : vector<4xf32>
    %5 = vector.multi_reduction <add>, %4, %cst [0] : vector<16x4xf32> to vector<4xf32>
    %6 = vector.shape_cast %5 : vector<4xf32> to vector<1x4xf32>
    %cst_8 = arith.constant 1.600000e+01 : f32
    %7 = vector.broadcast %cst_8 : f32 to vector<1x4xf32>
    %8 = arith.divf %6, %7 : vector<1x4xf32>
    %9 = vector.broadcast %8 : vector<1x4xf32> to vector<16x4xf32>
    %10 = arith.subf %4, %9 : vector<16x4xf32>
    %11 = arith.mulf %10, %10 : vector<16x4xf32>
    %cst_9 = arith.constant dense<0.000000e+00> : vector<4xf32>
    %12 = vector.multi_reduction <add>, %11, %cst_9 [0] : vector<16x4xf32> to vector<4xf32>
    %13 = vector.shape_cast %12 : vector<4xf32> to vector<1x4xf32>
    %cst_10 = arith.constant 1.600000e+01 : f32
    %14 = vector.broadcast %cst_10 : f32 to vector<1x4xf32>
    %15 = arith.divf %13, %14 : vector<1x4xf32>
    %cst_11 = arith.constant 9.99999974E-6 : f32
    %16 = vector.broadcast %cst_11 : f32 to vector<1x4xf32>
    %17 = arith.addf %15, %16 : vector<1x4xf32>
    %18 = math.rsqrt %17 : vector<1x4xf32>
    %cst_12 = arith.constant 9.99999974E-6 : f32
    %19 = vector.broadcast %cst_12 : f32 to vector<1x4xf32>
    %20 = arith.addf %15, %19 : vector<1x4xf32>
    %21 = math.sqrt %20 : vector<1x4xf32>
    %22 = vector.broadcast %8 : vector<1x4xf32> to vector<16x4xf32>
    %23 = arith.subf %4, %22 : vector<16x4xf32>
    %24 = vector.broadcast %18 : vector<1x4xf32> to vector<16x4xf32>
    %25 = arith.mulf %23, %24 : vector<16x4xf32>
    %26 = vector.broadcast %0 : vector<1x4xf32> to vector<16x4xf32>
    %27 = arith.mulf %25, %26 : vector<16x4xf32>
    %28 = vector.broadcast %1 : vector<1x4xf32> to vector<16x4xf32>
    %29 = arith.addf %27, %28 : vector<16x4xf32>
    %30 = tpu.transpose %29, [1, 0] : vector<16x4xf32> -> vector<4x16xf32>
    %c1 = arith.constant 1 : index
    %c0_13 = arith.constant 0 : index
    %c0_14 = arith.constant 0 : index
    %31 = vector.load %arg0[%c1, %c0_13, %c0_14] : memref<2x16x4xf32, #tpu.memory_space<vmem>>, vector<1x16x4xf32>
    %32 = vector.shape_cast %31 : vector<1x16x4xf32> to vector<16x4xf32>
    %cst_15 = arith.constant dense<0.000000e+00> : vector<4xf32>
    %33 = vector.multi_reduction <add>, %32, %cst_15 [0] : vector<16x4xf32> to vector<4xf32>
    %34 = vector.shape_cast %33 : vector<4xf32> to vector<1x4xf32>
    %cst_16 = arith.constant 1.600000e+01 : f32
    %35 = vector.broadcast %cst_16 : f32 to vector<1x4xf32>
    %36 = arith.divf %34, %35 : vector<1x4xf32>
    %37 = vector.broadcast %36 : vector<1x4xf32> to vector<16x4xf32>
    %38 = arith.subf %32, %37 : vector<16x4xf32>
    %39 = arith.mulf %38, %38 : vector<16x4xf32>
    %cst_17 = arith.constant dense<0.000000e+00> : vector<4xf32>
    %40 = vector.multi_reduction <add>, %39, %cst_17 [0] : vector<16x4xf32> to vector<4xf32>
    %41 = vector.shape_cast %40 : vector<4xf32> to vector<1x4xf32>
    %cst_18 = arith.constant 1.600000e+01 : f32
    %42 = vector.broadcast %cst_18 : f32 to vector<1x4xf32>
    %43 = arith.divf %41, %42 : vector<1x4xf32>
    %cst_19 = arith.constant 9.99999974E-6 : f32
    %44 = vector.broadcast %cst_19 : f32 to vector<1x4xf32>
    %45 = arith.addf %43, %44 : vector<1x4xf32>
    %46 = math.rsqrt %45 : vector<1x4xf32>
    %cst_20 = arith.constant 9.99999974E-6 : f32
    %47 = vector.broadcast %cst_20 : f32 to vector<1x4xf32>
    %48 = arith.addf %43, %47 : vector<1x4xf32>
    %49 = math.sqrt %48 : vector<1x4xf32>
    %50 = vector.broadcast %36 : vector<1x4xf32> to vector<16x4xf32>
    %51 = arith.subf %32, %50 : vector<16x4xf32>
    %52 = vector.broadcast %46 : vector<1x4xf32> to vector<16x4xf32>
    %53 = arith.mulf %51, %52 : vector<16x4xf32>
    %54 = vector.broadcast %0 : vector<1x4xf32> to vector<16x4xf32>
    %55 = arith.mulf %53, %54 : vector<16x4xf32>
    %56 = vector.broadcast %1 : vector<1x4xf32> to vector<16x4xf32>
    %57 = arith.addf %55, %56 : vector<16x4xf32>
    %58 = tpu.transpose %57, [1, 0] : vector<16x4xf32> -> vector<4x16xf32>
    %59 = tpu.concatenate %30, %58 in 0 : vector<4x16xf32>, vector<4x16xf32> -> vector<8x16xf32>
    %c0_21 = arith.constant 0 : index
    %c0_22 = arith.constant 0 : index
    %60 = vector.load %arg1[%c0_21, %c0_22] : memref<16x32xf32, #tpu.memory_space<vmem>>, vector<16x32xf32>
    %cst_23 = arith.constant dense<0.000000e+00> : vector<8x32xf32>
    %61 = tpu.matmul %59, %60, %cst_23 {dimension_numbers = #tpu.dot_dimension_numbers<[1], [0], [0], [1], [0, 0, 1, 1], [], []>} : vector<8x16xf32>, vector<16x32xf32>, vector<8x32xf32> -> vector<8x32xf32>
    %c0_24 = arith.constant 0 : index
    %c0_25 = arith.constant 0 : index
    %62 = vector.load %arg2[%c0_24, %c0_25] : memref<1x32xf32, #tpu.memory_space<vmem>>, vector<1x32xf32>
    %63 = vector.broadcast %62 : vector<1x32xf32> to vector<8x32xf32>
    %64 = arith.addf %61, %63 : vector<8x32xf32>
    %cst_26 = arith.constant 0.000000e+00 : f32
    %65 = vector.broadcast %cst_26 : f32 to vector<8x32xf32>
    %66 = arith.maximumf %64, %65 : vector<8x32xf32>
    %c0_27 = arith.constant 0 : index
    %c0_28 = arith.constant 0 : index
    %67 = vector.load %arg3[%c0_27, %c0_28] : memref<32x16xf32, #tpu.memory_space<vmem>>, vector<32x16xf32>
    %cst_29 = arith.constant dense<0.000000e+00> : vector<8x16xf32>
    %68 = tpu.matmul %66, %67, %cst_29 {dimension_numbers = #tpu.dot_dimension_numbers<[1], [0], [0], [1], [0, 0, 1, 1], [], []>} : vector<8x32xf32>, vector<32x16xf32>, vector<8x16xf32> -> vector<8x16xf32>
    %c0_30 = arith.constant 0 : index
    %c0_31 = arith.constant 0 : index
    %69 = vector.load %arg4[%c0_30, %c0_31] : memref<1x16xf32, #tpu.memory_space<vmem>>, vector<1x16xf32>
    %70 = vector.broadcast %69 : vector<1x16xf32> to vector<8x16xf32>
    %71 = arith.addf %68, %70 : vector<8x16xf32>
    %c0_32 = arith.constant 0 : index
    %c0_33 = arith.constant 0 : index
    %72 = vector.load %arg5[%c0_32, %c0_33] : memref<16x8xf32, #tpu.memory_space<vmem>>, vector<16x8xf32>
    %cst_34 = arith.constant dense<0.000000e+00> : vector<8x8xf32>
    %73 = tpu.matmul %71, %72, %cst_34 {dimension_numbers = #tpu.dot_dimension_numbers<[1], [0], [0], [1], [0, 0, 1, 1], [], []>} : vector<8x16xf32>, vector<16x8xf32>, vector<8x8xf32> -> vector<8x8xf32>
    %c0_35 = arith.constant 0 : index
    %c0_36 = arith.constant 0 : index
    %74 = vector.load %arg6[%c0_35, %c0_36] : memref<1x8xf32, #tpu.memory_space<vmem>>, vector<1x8xf32>
    %75 = vector.broadcast %74 : vector<1x8xf32> to vector<8x8xf32>
    %76 = arith.addf %73, %75 : vector<8x8xf32>
    %77 = tpu.transpose %76, [1, 0] : vector<8x8xf32> -> vector<8x8xf32>
    %78 = vector.extract_strided_slice %77 {offsets = [0, 0], sizes = [8, 4], strides = [1, 1]} : vector<8x8xf32> to vector<8x4xf32>
    %79 = vector.broadcast %1 : vector<1x4xf32> to vector<8x4xf32>
    %80 = arith.subf %78, %79 : vector<8x4xf32>
    %81 = vector.broadcast %2 : vector<1x4xf32> to vector<8x4xf32>
    %82 = arith.mulf %80, %81 : vector<8x4xf32>
    %83 = vector.broadcast %21 : vector<1x4xf32> to vector<8x4xf32>
    %84 = arith.mulf %82, %83 : vector<8x4xf32>
    %85 = vector.broadcast %8 : vector<1x4xf32> to vector<8x4xf32>
    %86 = arith.addf %84, %85 : vector<8x4xf32>
    %c0_37 = arith.constant 0 : index
    %c0_38 = arith.constant 0 : index
    %c0_39 = arith.constant 0 : index
    %87 = vector.load %arg10[%c0_37, %c0_38, %c0_39] : memref<2x8x4xf32, #tpu.memory_space<vmem>>, vector<1x8x4xf32>
    %88 = vector.shape_cast %87 : vector<1x8x4xf32> to vector<8x4xf32>
    %89 = vector.shape_cast %86 : vector<8x4xf32> to vector<1x8x4xf32>
    tpu.vector_store %arg10[%c0_37, %c0_38, %c0_39], %89 {strides = array<i32>} : memref<2x8x4xf32, #tpu.memory_space<vmem>>, vector<1x8x4xf32>,
    %90 = vector.extract_strided_slice %77 {offsets = [0, 4], sizes = [8, 4], strides = [1, 1]} : vector<8x8xf32> to vector<8x4xf32>
    %91 = vector.broadcast %1 : vector<1x4xf32> to vector<8x4xf32>
    %92 = arith.subf %90, %91 : vector<8x4xf32>
    %93 = vector.broadcast %2 : vector<1x4xf32> to vector<8x4xf32>
    %94 = arith.mulf %92, %93 : vector<8x4xf32>
    %95 = vector.broadcast %49 : vector<1x4xf32> to vector<8x4xf32>
    %96 = arith.mulf %94, %95 : vector<8x4xf32>
    %97 = vector.broadcast %36 : vector<1x4xf32> to vector<8x4xf32>
    %98 = arith.addf %96, %97 : vector<8x4xf32>
    %c1_40 = arith.constant 1 : index
    %c0_41 = arith.constant 0 : index
    %c0_42 = arith.constant 0 : index
    %99 = vector.load %arg10[%c1_40, %c0_41, %c0_42] : memref<2x8x4xf32, #tpu.memory_space<vmem>>, vector<1x8x4xf32>
    %100 = vector.shape_cast %99 : vector<1x8x4xf32> to vector<8x4xf32>
    %101 = vector.shape_cast %98 : vector<8x4xf32> to vector<1x8x4xf32>
    tpu.vector_store %arg10[%c1_40, %c0_41, %c0_42], %101 {strides = array<i32>} : memref<2x8x4xf32, #tpu.memory_space<vmem>>, vector<1x8x4xf32>,
    return
  }
}

</mosaic_0001>

<bundles_post_ra>
// kernel: rmlp_forward.1
= control target key start
LH: loop header
LB: loop body
LE: loop exit
PB: predicated region body
PF: predicated region fallthrough
CT: control target
= control target key end

     0   :  { %vm40_vm0 = vcmask 31744   ;;  %v595_v1 = vmov 0.0|0.0   ;;  %vm596_vm1 = vmmov 0   ;;  %vm202_vm2 = vcmask 1043456   ;;  %s598_s19 = smov 4   ;;  %s773_s0 = inlined_call_operand.vmem [shape: f32[2,16,4], index: 0, kind: input, shape index: {}]   ;;  %s774_s7 = inlined_call_operand.vmem [shape: f32[1,4], index: 7, kind: input, shape index: {}]   ;;  %s775_s8 = inlined_call_operand.vmem [shape: f32[1,4], index: 8, kind: input, shape index: {}]   ;;  %s776_s1 = inlined_call_operand.vmem [shape: f32[16,32], index: 1, kind: input, shape index: {}]   ;;  %s777_s3 = inlined_call_operand.vmem [shape: f32[32,16], index: 3, kind: input, shape index: {}]   ;;  %s778_s5 = inlined_call_operand.vmem [shape: f32[16,8], index: 5, kind: input, shape index: {}]   ;;  %s779_s2 = inlined_call_operand.vmem [shape: f32[1,32], index: 2, kind: input, shape index: {}]   ;;  %s780_s9 = inlined_call_operand.vmem [shape: f32[1,4], index: 9, kind: input, shape index: {}]   ;;  %s781_s4 = inlined_call_operand.vmem [shape: f32[1,16], index: 4, kind: input, shape index: {}]   ;;  %s782_s6 = inlined_call_operand.vmem [shape: f32[1,8], index: 6, kind: input, shape index: {}]   ;;  %s783_s10 = inlined_call_operand.vmem [shape: f32[2,8,4], index: 10, kind: output, shape index: {}]  }
   0x1   :  { %v528_v0 = vld [vmem:[%s773_s0 + $0x10] sm:$0xff]  ;;  %574 = vmatprep.subr.bf16.mxu0 %v595_v1  ;;  %577 = vmatprep.subr.bf16.mxu1 %v595_v1  ;;  %v529_v2 = vld [vmem:[%s773_s0 + $0x18] sm:$0xff]  ;;  %v38_v4 = vld [vmem:[%s773_s0] sm:$0xff]  ;;  %vm213_vm3 = vcmask 130048   ;;  %vm299_vm4 = vcmask 261120  }
   0x2   :  { %v128_v3 = vsel %vm40_vm0, %v528_v0, 0.0  ;;  %v39_v5 = vld [vmem:[%s773_s0 + $0x8] sm:$0xff]  ;;  %v129_v6 = vsel %vm40_vm0, %v529_v2, 0.0  ;;  %v41_v7 = vsel %vm40_vm0, %v38_v4, 0.0  ;;  %v526_v56 = vld [vmem:[%s774_s7] ss:$0 sm:$0xff] }
   0x3   :  { %v42_v8 = vsel %vm40_vm0, %v39_v5, 0.0  ;;  %v130_v9 = vadd.f32 %v129_v6, %v128_v3  ;;  %v699_v60 = vld [vmem:[%s775_s8] ss:$0 sm:$0xff]  ;;  %v205_v6 = vld [vmem:[%s776_s1 + $0x8] sm:$0xff] }
   0x4   :  { %v43_v10 = vadd.f32 %v42_v8, %v41_v7 }
   0x5   :  { %v131_v11 = vrot.slane %v130_v9, 4 }
   0x6   :  { %v44_v12 = vrot.slane %v43_v10, 4 }
   0x7   :  { %v132_v13 = vadd.f32 %v131_v11, %v130_v9  ;;  %v597_v11 = vmov 0.0  }
   0x8   :  { %v45_v14 = vadd.f32 %v44_v12, %v43_v10  ;;  %553 = vmatprep.mubr.msk.f32.mxu0 %vm596_vm1, %v597_v11  ;;  %564 = vmatprep.mubr.msk.f32.mxu1 %vm596_vm1, %v597_v11  ;;  %v288_v12 = vld [vmem:[%s777_s3] sm:$0xff] }
   0x9   :  { %v133_v15 = vrot.slane %v132_v13, 2 }
   0xa   :  { %v46_v16 = vrot.slane %v45_v14, 2 }
   0xb   :  { %v134_v17 = vadd.f32 %v133_v15, %v132_v13  ;;  %v289_v13 = vld [vmem:[%s777_s3 + $0x8] sm:$0xff] }
   0xc   :  { %v47_v18 = vadd.f32 %v46_v16, %v45_v14  ;;  %v578_v14 = vpack.c.bf16 %v289_v13, %v288_v12 }
   0xd   :  { %v135_v19 = vrot.slane %v134_v17, 1 }
   0xe   :  { %v48_v20 = vrot.slane %v47_v18, 1  ;;  %579 = vmatpush3.bf16.msra.mxu1 %v578_v14 }
   0xf   :  { %v136_v21 = vadd.f32 %v135_v19, %v134_v17  ;;  %580 = vmatprep.subr.bf16.mxu1 %v595_v1  ;;  %v290_v19 = vld [vmem:[%s777_s3 + $0x10] sm:$0xff] }
  0x10   :  { %v49_v22 = vadd.f32 %v48_v20, %v47_v18  ;;  %v291_v20 = vld [vmem:[%s777_s3 + $0x18] sm:$0xff] }
  0x11   :  { %v673_v23 = vmul.f32 0.0625, %v136_v21  ;;  %v581_v21 = vpack.c.bf16 %v291_v20, %v290_v19 }
  0x12   :  { %v675_v24 = vmul.f32 0.0625, %v49_v22  ;;  %v374_v22 = vld [vmem:[%s778_s5 + $0x8] sm:$0xff] }
  0x13   :  { %v138_v25 = vsub.f32 %v528_v0, %v673_v23  ;;  %v139_v26 = vsub.f32 %v529_v2, %v673_v23  ;;  %582 = vmatpush3.bf16.msra.mxu1 %v581_v21 }
  0x14   :  { %v52_v27 = vsub.f32 %v38_v4, %v675_v24  ;;  %v53_v28 = vsub.f32 %v39_v5, %v675_v24  ;;  %v204_v5 = vld [vmem:[%s776_s1] sm:$0xff] }
  0x15   :  { %v140_v29 = vmul.f32 %v138_v25, %v138_v25  ;;  %v141_v30 = vmul.f32 %v139_v26, %v139_v26  ;;  %v575_v8 = vpack.c.bf16 %v205_v6, %v204_v5 }
  0x16   :  { %v54_v31 = vmul.f32 %v52_v27, %v52_v27  ;;  %v55_v32 = vmul.f32 %v53_v28, %v53_v28 }
  0x17   :  { %v142_v33 = vsel %vm40_vm0, %v140_v29, 0.0  ;;  %v143_v34 = vsel %vm40_vm0, %v141_v30, 0.0  ;;  %576 = vmatpush3.bf16.msra.mxu0 %v575_v8 }
  0x18   :  { %v56_v35 = vsel %vm40_vm0, %v54_v31, 0.0  ;;  %v57_v36 = vsel %vm40_vm0, %v55_v32, 0.0  ;;  %v144_v37 = vadd.f32 %v143_v34, %v142_v33  ;;  %583 = vmatprep.subr.bf16.mxu0 %v595_v1  ;;  %v373_v1 = vld [vmem:[%s778_s5] sm:$0xff] }
  0x19   :  { %v58_v38 = vadd.f32 %v57_v36, %v56_v35  ;;  %v536_v33 = vld [vmem:[%s780_s9] ss:$0 sm:$0xff] }
  0x1a   :  { %v145_v39 = vrot.slane %v144_v37, 4  ;;  %v532_v36 = vld [vmem:[%s781_s4] ss:$0 sm:$0xff]  ;;  %s599_s4 = smov 124  }
  0x1b   :  { %v59_v40 = vrot.slane %v58_v38, 4 }
  0x1c   :  { %v146_v41 = vadd.f32 %v145_v39, %v144_v37 }
  0x1d   :  { %v60_v42 = vadd.f32 %v59_v40, %v58_v38  ;;  %v534_v40 = vld [vmem:[%s782_s6] ss:$0 sm:$0xff] }
  0x1e   :  { %v147_v43 = vrot.slane %v146_v41, 2 }
  0x1f   :  { %v61_v44 = vrot.slane %v60_v42, 2 }
  0x20   :  { %v148_v45 = vadd.f32 %v147_v43, %v146_v41 }
  0x21   :  { %v62_v46 = vadd.f32 %v61_v44, %v60_v42 }
  0x22   :  { %v149_v47 = vrot.slane %v148_v45, 1 }
  0x23   :  { %v63_v48 = vrot.slane %v62_v46, 1 }
  0x24   :  { %v150_v49 = vadd.f32 %v149_v47, %v148_v45 }
  0x25   :  { %v64_v50 = vadd.f32 %v63_v48, %v62_v46 }
  0x26   :  { %v151_v51 = vmul.f32 0.0625, %v150_v49 }
  0x27   :  { %v65_v52 = vmul.f32 0.0625, %v64_v50 }
  0x28   :  { %v685_v53 = vadd.f32 1e-05, %v151_v51 }
  0x29   :  { %v687_v54 = vadd.f32 1e-05, %v65_v52 }
  0x2a   :  { %591 = vrsqrt.f32 %v685_v53  ;;  %vm156_vm5 = vcmp.eq.f32.partialorder %v685_v53, inf  ;;  %vm158_vm6 = vcmp.eq.f32.partialorder %v685_v53, 0.0  ;;  %v159_v32 = vand.u32 2147483648, %v685_v53 }
  0x2b   :  { %593 = vrsqrt.f32 %v687_v54  ;;  %vm70_vm7 = vcmp.eq.f32.partialorder %v687_v54, inf  ;;  %v73_v48 = vand.u32 2147483648, %v687_v54  ;;  %vm72_vm8 = vcmp.eq.f32.partialorder %v687_v54, 0.0 }
  0x34   :  { %v592_v55 = vpop.eup %591 }
  0x35   :  { %v694_v57 = vpop.eup %593  ;;  %v161_v58 = vmul.f32 %v592_v55, %v138_v25  ;;  %v162_v59 = vmul.f32 %v592_v55, %v139_v26  ;;  %v584_v25 = vpack.c.bf16 %v374_v22, %v373_v1  ;;  %v530_v26 = vld [vmem:[%s779_s2] ss:$0 sm:$0xff]  ;;  %v155_v31 = vmul.f32 %v592_v55, %v685_v53 }
  0x36   :  { %v75_v61 = vmul.f32 %v694_v57, %v52_v27  ;;  %v76_v62 = vmul.f32 %v694_v57, %v53_v28 }
  0x37   :  { %v163_v63 = vmul.f32 %v526_v56, %v161_v58  ;;  %v164_v0 = vmul.f32 %v526_v56, %v162_v59  ;;  %v157_v34 = vsel %vm156_vm5, %v685_v53, %v155_v31 }
  0x38   :  { %v83_v2 = vmul.f32 %v526_v56, %v75_v61  ;;  %v84_v3 = vmul.f32 %v526_v56, %v76_v62  ;;  %v160_v35 = vsel %vm158_vm6, %v159_v32, %v157_v34 }
  0x39   :  { %v165_v4 = vadd.f32 %v699_v60, %v163_v63  ;;  %v166_v9 = vadd.f32 %v699_v60, %v164_v0 }
  0x3a   :  { %v91_v7 = vadd.f32 %v699_v60, %v83_v2  ;;  %v92_v10 = vadd.f32 %v699_v60, %v84_v3 }
  0x3b   :  { %167 = vxpose.xlu0.b32.start [1/2] (short) (narrow) %v165_v4, 8 }
  0x3c   :  { %93 = vxpose.xlu1.b32.start [1/2] (short) (narrow) %v91_v7, 8 }
  0x3f   :  { %168 = vxpose.xlu0.b32.end [2/2] (short) (narrow) %v166_v9, 8 }
  0x40   :  { %94 = vxpose.xlu1.b32.end [2/2] (short) (narrow) %v92_v10, 8 }
  0x5e   :  { %502 = vrot.lane.b32.xlu1 %v536_v33, %s598_s19 }
  0x62   :  { %507 = vrot.lane.b32.xlu1 %v160_v35, %s598_s19 }
  0x66   :  { %512 = vrot.lane.b32.xlu1 %v673_v23, %s598_s19  ;;  %v69_v23 = vmul.f32 %v694_v57, %v687_v54 }
  0x68   :  { %498 = vrot.lane.b32.xlu0 %v699_v60, %s598_s19  ;;  %v71_v49 = vsel %vm70_vm7, %v687_v54, %v69_v23 }
  0x69   :  { %v74_v53 = vsel %vm72_vm8, %v73_v48, %v71_v49 }
  0xbb   :  { %v183_v15 = vpop.trf.xlu0 }
  0xbc   :  { %v200_v16 = vrot.slane %v183_v15, 4  ;;  %v109_v17 = vpop.trf.xlu1 }
  0xbe   :  { %v203_v18 = vsel %vm202_vm2, %v109_v17, %v200_v16 }
  0xbf   :  { %554 = vmatmul.mubr.msk.f32.vlgmr.msra.gmra.mrb[0].mxu0 %vm213_vm3, %v203_v18 }
  0xc0   :  { %571 = vmatprep.mubr.msk.f32.mxu0 %vm596_vm1, %v597_v11  ;;  %585 = vmatpush3.bf16.msra.mxu0 %v584_v25 }
  0xd0   :  { %v503_v44 = vpop.permute.xlu1 %502 }
  0xd4   :  { %v508_v45 = vpop.permute.xlu1 %507 }
  0xd8   :  { %v513_v46 = vpop.permute.xlu1 %512 }
  0xda   :  { %v499_v47 = vpop.permute.xlu0 %498 }
 0x192   :  { %v283_v27 = vpop.f32.mrb[0].mxu0 }
 0x193   :  { %v284_v28 = vadd.f32 %v530_v26, %v283_v27  ;;  %v555_v29 = vpop.f32.mrb[1].mxu0 }
 0x195   :  { %v287_v30 = vmax.f32 %v284_v28, 0.0 }
 0x197   :  { %565 = vmatmul.mubr.msk.f32.vlgmr.msra.gmra.mrb[0].mxu1 %vm299_vm4, %v287_v30 }
 0x26a   :  { %v369_v37 = vpop.f32.mrb[0].mxu1 }
 0x26b   :  { %v370_v38 = vadd.f32 %v532_v36, %v369_v37  ;;  %v566_v39 = vpop.f32.mrb[1].mxu1 }
 0x26d   :  { %572 = vmatmul.mubr.msk.f32.vlgmr.msra.gmra.mrb[2].mxu0 %vm213_vm3, %v370_v38 }
 0x340   :  { %v451_v41 = vpop.f32.mrb[2].mxu0 }
 0x341   :  { %v452_v42 = vadd.f32 %v534_v40, %v451_v41  ;;  %v573_v43 = vpop.f32.mrb[3].mxu0 }
 0x343   :  { %455 = vxpose.xlu1.b32.start.end [1/1] (short) (narrow) %v452_v42, 8 }
 0x3c3   :  { %v471_v50 = vpop.trf.xlu1 }
 0x3c4   :  { %v487_v51 = vsub.f32 %v471_v50, %v699_v60  ;;  %v501_v52 = vsub.f32 %v471_v50, %v499_v47 }
 0x3c6   :  { %v494_v55 = vmul.f32 %v536_v33, %v487_v51  ;;  %v505_v56 = vmul.f32 %v503_v44, %v501_v52 }
 0x3c8   :  { %v495_v58 = vmul.f32 %v494_v55, %v74_v53  ;;  %v510_v59 = vmul.f32 %v508_v45, %v505_v56 }
 0x3ca   :  { %v496_v57 = vadd.f32 %v495_v58, %v675_v24  ;;  %v515_v61 = vadd.f32 %v513_v46, %v510_v59 }
 0x3cc   :  { %517 = vrot.lane.b32.xlu0 %v515_v61, %s599_s4  ;;  %497 = vst.msk [vmem:[%s783_s10] sm:$0xff] %vm40_vm0, %v496_v57 }
 0x43e   :  { %v518_v54 = vpop.permute.xlu0 %517 }
 0x43f   :  { %537 = vst.msk [vmem:[%s783_s10 + $0x8] sm:$0xff] %vm40_vm0, %v518_v54 }

</bundles_post_ra>
